<compile_context>
chip_gen: v7x
topology: tpu7x:2x2x1
jax: 0.10.0
libtpu: 0.0.40
codegen_flags: <defaults>
</compile_context>

<pallas_src>
import jax
import jax.numpy as jnp
import numpy as np
from jax.experimental import pallas as pl
from jax.experimental.pallas import tpu as pltpu


def _round_up(x, m):
    return ((x + m - 1) // m) * m


def _inverse_cheb_kernel(coef_ref, basis_ref, out_ref):
    # coef_ref  : (TM, deg)  tile of coefficient rows (full deg, no K loop)
    # basis_ref : (deg, TN)  Chebyshev basis tile (resident across D sweep)
    # out_ref   : (TM, TN)   reconstructed function values
    out_ref[...] = jnp.dot(
        coef_ref[...], basis_ref[...],
        preferred_element_type=jnp.float32,
    ).astype(out_ref.dtype)


def _vmem_limit_bytes():
    """Generation-aware scoped-VMEM limit (96 MiB on 128-MiB chips, 48 MiB on v7x)."""
    cap = 64 * 1024 * 1024  # conservative default = v7x physical VMEM per core
    try:
        info = pltpu.get_tpu_info()
        cap = int(getattr(info, "vmem_capacity_bytes", cap))
    except Exception:
        pass
    return min((cap * 3) // 4, 96 * 1024 * 1024)


def _choose_tiles(D, N, deg, vmem_limit):
    """Pick (tm, tn): big tiles to amortize ~0.35us/step overhead, VMEM-bounded,
    balanced to minimize padding, with >= 2 grid steps for v7x megacore."""
    D8 = _round_up(max(D, 1), 8)
    N128 = _round_up(max(N, 1), 128)

    tm = min(1024, D8)
    tn = min(2048, N128)

    # Working set per step (double-buffered): 2*(tm*deg + deg*tn + tm*tn)*4 B.
    usable = int(vmem_limit * 0.6)  # headroom for pipeline bookkeeping

    def step_bytes(tm_, tn_):
        return 8 * (tm_ * deg + deg * tn_ + tm_ * tn_)

    while step_bytes(tm, tn) > usable and tn > 512:
        tn //= 2
    while step_bytes(tm, tn) > usable and tm > 128:
        tm //= 2

    # Balance tiles across the grid so padding stays small.
    gd = pl.cdiv(D8, tm)
    gn = pl.cdiv(N128, tn)

    # v7x has 2 TensorCores: make sure there are >= 2 parallel grid steps
    # whenever the problem is big enough to split.
    if gd * gn < 2:
        if D8 >= 16:
            gd = 2
        elif N128 >= 256:
            gn = 2

    tm = _round_up(pl.cdiv(D8, gd), 8)
    tn = _round_up(pl.cdiv(N128, gn), 128)
    return tm, tn


def inverse_chebyshev_pallas(coeffs, basis, *, out_dtype=jnp.float32):
    """coeffs: (D, deg) f32, basis: (deg, N) f32  ->  (D, N) out_dtype."""
    D, deg = coeffs.shape
    deg_b, N = basis.shape
    assert deg_b == deg

    vmem_limit = _vmem_limit_bytes()
    tm, tn = _choose_tiles(D, N, deg, vmem_limit)

    D_pad = _round_up(D, tm)
    N_pad = _round_up(N, tn)          # tn is a multiple of 128 -> lane-dense stores
    if D_pad != D:
        coeffs = jnp.pad(coeffs, ((0, D_pad - D), (0, 0)))
    if N_pad != N:
        basis = jnp.pad(basis, ((0, 0), (0, N_pad - N)))

    grid = (N_pad // tn, D_pad // tm)  # N outer, D inner -> basis resident over D sweep

    out = pl.pallas_call(
        _inverse_cheb_kernel,
        out_shape=jax.ShapeDtypeStruct((D_pad, N_pad), out_dtype),
        grid_spec=pl.GridSpec(
            grid=grid,
            in_specs=[
                # coefficient tile: varies with the inner (D) axis only; tiny re-DMA.
                pl.BlockSpec((tm, deg), lambda j, i: (i, 0)),
                # basis tile: constant along the inner D axis -> stays in VMEM.
                pl.BlockSpec((deg, tn), lambda j, i: (0, j)),
            ],
            out_specs=pl.BlockSpec((tm, tn), lambda j, i: (i, j)),
        ),
        compiler_params=pltpu.CompilerParams(
            dimension_semantics=("parallel", "parallel"),
            vmem_limit_bytes=int(vmem_limit),
        ),
    )(coeffs, basis)

    # Only pay the slice (a second HBM copy) when padding was actually applied.
    if D_pad != D or N_pad != N:
        out = out[:D, :N]
    return out


class InverseChebyshevApproximation:
    """JAX/Pallas port of the PyTorch module (deterministic, no learned params)."""

    def __init__(self, deg):
        self.deg = deg

    def __call__(self, x, a):
        x = jnp.asarray(x, jnp.float32).reshape(-1)              # (N,)
        # Cheap insurance against float noise at |x| == 1 producing NaNs
        # (no-op for in-range inputs; PyTorch would NaN for |x| > 1).
        x = jnp.clip(x, -1.0, 1.0)
        k = jnp.arange(self.deg, dtype=jnp.float32)
        # basis[j, n] = cos(j * acos(x[n]))  (transpose of torch's (N, deg))
        basis = jnp.cos(k[:, None] * jnp.arccos(x)[None, :])     # (deg, N)
        coeffs = jnp.asarray(a, jnp.float32).reshape(-1, self.deg)  # (D, deg)
        return inverse_chebyshev_pallas(coeffs, basis)           # (D, N)


if __name__ == "__main__":
    key = jax.random.PRNGKey(0)
    deg = 8     # Chebyshev degree
    D = 512     # number of coefficient vectors (splits into 2 parallel row tiles)
    N = 256     # number of evaluation points   (lane-dense multiple of 128)

    kx, ka = jax.random.split(key)
    # acos needs |x| <= 1
    x = jax.random.uniform(kx, (N,), dtype=jnp.float32, minval=-1.0, maxval=1.0)
    a = jax.random.normal(ka, (D * deg,), dtype=jnp.float32)

    model = InverseChebyshevApproximation(deg)
    out = jax.block_until_ready(model(x, a))

    # Pure-JAX reference mirroring the PyTorch forward exactly.
    k = jnp.arange(deg, dtype=jnp.float32)
    transposed_basis = jnp.cos(k[None, :] * jnp.arccos(x)[:, None])       # (N, deg)
    coefficients = a.reshape(-1, deg)                                     # (D, deg)
    ref = (coefficients[:, None, :] * transposed_basis[None, :, :]).sum(axis=2)

    assert out.shape == (D, N)
    np.testing.assert_allclose(np.asarray(out), np.asarray(ref), rtol=1e-2, atol=1e-2)
    print("KERNEL_OK")
</pallas_src>

<mosaic_0001>
module attributes {stable_mosaic.version = 11 : i64} {
  func.func @_inverse_cheb_kernel(%arg0: i32, %arg1: i32, %arg2: memref<256x8xf32, #tpu.memory_space<vmem>>, %arg3: memref<8x256xf32, #tpu.memory_space<vmem>>, %arg4: memref<256x256xf32, #tpu.memory_space<vmem>>) attributes {dimension_semantics = [#tpu.dimension_semantics<parallel>, #tpu.dimension_semantics<parallel>], iteration_bounds = array<i64: 1, 2>, scalar_prefetch = 0 : i64, scratch_operands = 0 : i64, tpu.core_type = #tpu.core_type<tc>, window_params = [{transform_indices = @transform_0, window_bounds = array<i64: 256, 8>}, {transform_indices = @transform_1, window_bounds = array<i64: 8, 256>}, {transform_indices = @transform_2, window_bounds = array<i64: 256, 256>}]} {
    %c0 = arith.constant 0 : index
    %c0_0 = arith.constant 0 : index
    %0 = vector.load %arg2[%c0, %c0_0] : memref<256x8xf32, #tpu.memory_space<vmem>>, vector<256x8xf32>
    %c0_1 = arith.constant 0 : index
    %c0_2 = arith.constant 0 : index
    %1 = vector.load %arg3[%c0_1, %c0_2] : memref<8x256xf32, #tpu.memory_space<vmem>>, vector<8x256xf32>
    %cst = arith.constant dense<0.000000e+00> : vector<256x256xf32>
    %2 = tpu.matmul %0, %1, %cst {dimension_numbers = #tpu.dot_dimension_numbers<[1], [0], [0], [1], [0, 0, 1, 1], [], []>} : vector<256x8xf32>, vector<8x256xf32>, vector<256x256xf32> -> vector<256x256xf32>
    %c0_3 = arith.constant 0 : index
    %c0_4 = arith.constant 0 : index
    %3 = vector.load %arg4[%c0_3, %c0_4] : memref<256x256xf32, #tpu.memory_space<vmem>>, vector<256x256xf32>
    tpu.vector_store %arg4[%c0_3, %c0_4], %2 {strides = array<i32>} : memref<256x256xf32, #tpu.memory_space<vmem>>, vector<256x256xf32>,
    return
  }
  func.func @transform_0(%arg0: i32, %arg1: i32) -> (i32, i32) {
    %c0_i32 = arith.constant 0 : i32
    %c0_i32_0 = arith.constant 0 : i32
    return %arg1, %c0_i32 : i32, i32
  }
  func.func @transform_1(%arg0: i32, %arg1: i32) -> (i32, i32) {
    %c0_i32 = arith.constant 0 : i32
    %c0_i32_0 = arith.constant 0 : i32
    return %c0_i32, %arg0 : i32, i32
  }
  func.func @transform_2(%arg0: i32, %arg1: i32) -> (i32, i32) {
    %c0_i32 = arith.constant 0 : i32
    return %arg1, %arg0 : i32, i32
  }
}

</mosaic_0001>

<bundles_post_ra>
// kernel: tpu_custom_call.1
= control target key start
LH: loop header
LB: loop body
LE: loop exit
PB: predicated region body
PF: predicated region fallthrough
CT: control target
= control target key end

     0   :  { %7 = vsyncpa [#allocation3], 0  ;;  %s1236_s0 = inlined_call_operand.vmem [shape: f32[512,8], index: 0, kind: input, shape index: {}]   ;;  %s1237_s1 = inlined_call_operand.vmem [shape: f32[8,256], index: 1, kind: input, shape index: {}]   ;;  %s1238_s2 = inlined_call_operand.hbm [shape: f32[512,256], index: 2, kind: output, shape index: {}]  }
   0x1   :  { %9 = vsyncpa [#allocation3 + $0x1], 0  ;;  %s947_s9 = smov 0   ;;  %s949_s10 = smov 0  }
   0x2   :  { %s951_s11 = smov 0   ;;  %s953_s12 = smov 0  }
   0x3   :  { %s955_s13 = smov 0   ;;  %s957_s14 = smov 0  }
   0x4 LB: > { %s739_s15 = sadd.s32 4294967295, %s926_s14   ;;  %s740_s16 = sadd.s32 4294967294, %s926_s14   ;;  %s926_s14 = sphi %s957_s14, %s15_s14   ;;  %s922_s13 = sphi %s955_s13, %s1245_s13   ;;  %s918_s12 = sphi %s953_s12, %s1244_s12   ;;  %s914_s11 = sphi %s951_s11, %s1243_s11   ;;  %s910_s10 = sphi %s949_s10, %s1242_s10   ;;  %s906_s9 = sphi %s947_s9, %s1241_s9  }
   0x5   : > { %s24_s17 = sadd.s32 1, %s922_s13  ;;  %s88_s18 = sadd.s32 1, %s914_s11 }
   0x6   : > { %p25_p0 = scmp.ge.s32.totalorder %s24_s17, 2  ;;  %p98_p1 = scmp.ne.s32.totalorder %s914_s11, %s910_s10 }
   0x7   : > { %p99_p2 = scmp.eq.s32.totalorder %s739_s15, 1  ;;  %p104_p3 = scmp.ne.s32.totalorder %s910_s10, %s906_s9 }
   0x8   : > { %s1247_s17 = smov (%p25_p0, %s24_s17), 0  ;;  %p105_p5 = scmp.eq.s32.totalorder %s740_s16, 1 }
   0x9   : > { %p987_p4 = por %p99_p2, %p98_p1  ;;  %s83_s20 = ssub.s32 %s922_s13, %s1247_s17 }
   0xa   : > { %p744_p6 = scmp.ge.s32.totalorder %s926_s14, 1  ;;  %p86_p7 = scmp.eq.s32.totalorder %s83_s20, 0 }
   0xb   : > { %p994_p8 = por %p105_p5, %p104_p3  ;;  %p141_p9 = scmp.lt.s32.totalorder %s926_s14, 3 }
   0xc   : > { %s1000_s22 = scalar_select %p86_p7, %s914_s11, %s88_s18  }
   0xd   : > { %p142_p10 = pnand %p744_p6, %p141_p9 }
   0xe   : > { %v215_v0 = vld [vmem:[%s1237_s1 + $0x8] sm:$0xff] (!%p142_p10)  ;;  %v214_v1 = vld [vmem:[%s1237_s1] sm:$0xff] (!%p142_p10)  ;;  %s746_s27 = sshll.u32 (!%p142_p10), %s918_s12, 5  ;;  %v928_v2 = vmov (!%p142_p10), 0.0   ;;  %vm216_vm0 = vcmask (!%p142_p10), 64512   ;;  %s165_s4 = sand.u32 (!%p142_p10), 1, %s910_s10  }
   0xf   : > { %145 = sbr.rel (%p142_p10) target bundleno = 315 (0x13b), region = 28  ;;  %313 = vmatprep.subr.mxu0 (!%p142_p10), %v215_v0  ;;  %788 = vmatprep.subr.mxu1 (!%p142_p10), %v215_v0  ;;  %p169_p11 = scmp.lt.s32.totalorder (!%p142_p10), %s746_s27, 63 }
  0x10   : > { %314 = vmatpush1.msra.mxu0 (!%p142_p10), %v214_v1  ;;  %789 = vmatpush1.msra.mxu1 (!%p142_p10), %v214_v1  ;;  %s745_s5 = sshll.u32 (!%p142_p10), %s165_s4, 9  ;;  %s787_s7 = sshll.u32 (!%p142_p10), %s918_s12, 13 }
  0x11   : > { %377 = vmatprep.mubr.f32.mxu0 (!%p142_p10), %v928_v2  ;;  %473 = vmatprep.mubr.f32.mxu1 (!%p142_p10), %v928_v2  ;;  %s1113_s6 = scalar_lea.vmem (!%p142_p10), [#allocation2], %s745_s5  ;;  %s1180_s18 = scalar_lea.hbm (!%p142_p10), %s1238_s2, %s787_s7 }
  0x12   : > { %s651_s8 = sshll.u32 (!%p142_p10), %s1113_s6, 4  ;;  %s1190_s12 = scalar_lea.sflag (!%p142_p10), [#allocation3], %s165_s4  ;;  %s1182_s8 = int_to_ptr.vmem [resolvable:$true] %s651_s8 }
  0x13   : > { %s848_s20 = scalar_lea.vmem (!%p142_p10), %s1182_s8, 8192  ;;  %s929_s23 = smov (!%p142_p10), [#allocation2]  }
  0x14   : > { %p849_p12 = scmp.ne.s32.totalorder (!%p142_p10), %s1182_s8, %s848_s20  ;;  %s852_s24 = sshll.u32 (!%p142_p10), %s929_s23, 4  ;;  %s853_s24 = int_to_ptr.vmem [resolvable:$false] %s852_s24 }
  0x15   : > { %s854_s25 = scalar_lea.vmem (!%p142_p10), %s853_s24, 16384  ;;  %p855_p1 = scmp.lt.s32.totalorder (!%p142_p10), %s1182_s8, %s853_s24 }
  0x16   : > { %s1249_s27 = smov (!%p169_p11, %s746_s27), 63  ;;  %p850_p13 = pnand %p849_p12, %p987_p4 }
  0x17   : > { %s747_s28 = sshll.u32 %s1249_s27, 3  ;;  %p856_p2 = scmp.lt.s32.totalorder %s854_s25, %s848_s20 }
  0x18   : > { %s1014_s3 = scalar_lea.vmem %s1236_s0, %s747_s28  ;;  %p851_p0 = pneg %p850_p13 }
  0x19   : > { %v182_v3 = vld [vmem:[%s1014_s3] sm:$0xff]  ;;  %v183_v5 = vld [vmem:[%s1014_s3 + $0x8] sm:$0xff]  ;;  %v184_v7 = vld [vmem:[%s1014_s3 + $0x10] sm:$0xff]  ;;  %p857_p3 = por %p856_p2, %p855_p1 }
  0x1a   : > { %v198_v4 = vld [vmem:[%s1014_s3 + $0x80] sm:$0xff]  ;;  %748 = vmatmul.mubr.msk.f32.vlgmr.msra.gmra.mrb[0].mxu0 %vm216_vm0, %v182_v3  ;;  %v199_v6 = vld [vmem:[%s1014_s3 + $0x88] sm:$0xff]  ;;  %v200_v8 = vld [vmem:[%s1014_s3 + $0x90] sm:$0xff] }
  0x1b   : > { %764 = vmatmul.mubr.msk.f32.vlgmr.msra.gmra.mrb[0].mxu1 %vm216_vm0, %v198_v4  ;;  %383 = vmatprep.mubr.f32.mxu0 %v928_v2  ;;  %v185_v9 = vld [vmem:[%s1014_s3 + $0x18] sm:$0xff]  ;;  %v186_v11 = vld [vmem:[%s1014_s3 + $0x20] sm:$0xff]  ;;  %v187_v13 = vld [vmem:[%s1014_s3 + $0x28] sm:$0xff]  ;;  %p858_p5 = pnand %p857_p3, %p851_p0 }
  0x1c   : > { %479 = vmatprep.mubr.f32.mxu1 %v928_v2  ;;  %v201_v10 = vld [vmem:[%s1014_s3 + $0x98] sm:$0xff]  ;;  %v202_v12 = vld [vmem:[%s1014_s3 + $0xa0] sm:$0xff]  ;;  %v203_v14 = vld [vmem:[%s1014_s3 + $0xa8] sm:$0xff] }
  0x1d   : > { %v188_v15 = vld [vmem:[%s1014_s3 + $0x30] sm:$0xff]  ;;  %v189_v17 = vld [vmem:[%s1014_s3 + $0x38] sm:$0xff]  ;;  %v190_v19 = vld [vmem:[%s1014_s3 + $0x40] sm:$0xff] }
  0x1e   : > { %749 = vmatmul.mubr.msk.f32.gmra.mrb[2].mxu0 %vm216_vm0, %v183_v5  ;;  %v204_v16 = vld [vmem:[%s1014_s3 + $0xb0] sm:$0xff]  ;;  %v205_v18 = vld [vmem:[%s1014_s3 + $0xb8] sm:$0xff]  ;;  %v206_v20 = vld [vmem:[%s1014_s3 + $0xc0] sm:$0xff] }
  0x1f   : > { %765 = vmatmul.mubr.msk.f32.gmra.mrb[2].mxu1 %vm216_vm0, %v199_v6  ;;  %389 = vmatprep.mubr.f32.mxu0 %v928_v2  ;;  %v191_v21 = vld [vmem:[%s1014_s3 + $0x48] sm:$0xff]  ;;  %v192_v23 = vld [vmem:[%s1014_s3 + $0x50] sm:$0xff]  ;;  %v193_v25 = vld [vmem:[%s1014_s3 + $0x58] sm:$0xff] }
  0x20   : > { %485 = vmatprep.mubr.f32.mxu1 %v928_v2  ;;  %v207_v22 = vld [vmem:[%s1014_s3 + $0xc8] sm:$0xff]  ;;  %v208_v24 = vld [vmem:[%s1014_s3 + $0xd0] sm:$0xff]  ;;  %v209_v26 = vld [vmem:[%s1014_s3 + $0xd8] sm:$0xff] }
  0x21   : > { %v194_v27 = vld [vmem:[%s1014_s3 + $0x60] sm:$0xff]  ;;  %v195_v29 = vld [vmem:[%s1014_s3 + $0x68] sm:$0xff]  ;;  %v196_v31 = vld [vmem:[%s1014_s3 + $0x70] sm:$0xff] }
  0x22   : > { %750 = vmatmul.mubr.msk.f32.gmra.mrb[4].mxu0 %vm216_vm0, %v184_v7  ;;  %v210_v28 = vld [vmem:[%s1014_s3 + $0xe0] sm:$0xff]  ;;  %v211_v30 = vld [vmem:[%s1014_s3 + $0xe8] sm:$0xff]  ;;  %v212_v32 = vld [vmem:[%s1014_s3 + $0xf0] sm:$0xff] }
  0x23   : > { %766 = vmatmul.mubr.msk.f32.gmra.mrb[4].mxu1 %vm216_vm0, %v200_v8  ;;  %395 = vmatprep.mubr.f32.mxu0 %v928_v2  ;;  %v197_v33 = vld [vmem:[%s1014_s3 + $0x78] sm:$0xff] }
  0x24   : > { %491 = vmatprep.mubr.f32.mxu1 %v928_v2  ;;  %v213_v34 = vld [vmem:[%s1014_s3 + $0xf8] sm:$0xff] }
  0x26   : > { %751 = vmatmul.mubr.msk.f32.gmra.mrb[6].mxu0 %vm216_vm0, %v185_v9 }
  0x27   : > { %767 = vmatmul.mubr.msk.f32.gmra.mrb[6].mxu1 %vm216_vm0, %v201_v10  ;;  %401 = vmatprep.mubr.f32.mxu0 %v928_v2 }
  0x28   : > { %497 = vmatprep.mubr.f32.mxu1 %v928_v2 }
  0x2a   : > { %752 = vmatmul.mubr.msk.f32.gmra.mrb[8].mxu0 %vm216_vm0, %v186_v11 }
  0x2b   : > { %768 = vmatmul.mubr.msk.f32.gmra.mrb[8].mxu1 %vm216_vm0, %v202_v12  ;;  %407 = vmatprep.mubr.f32.mxu0 %v928_v2 }
  0x2c   : > { %503 = vmatprep.mubr.f32.mxu1 %v928_v2 }
  0x2e   : > { %753 = vmatmul.mubr.msk.f32.gmra.mrb[10].mxu0 %vm216_vm0, %v187_v13 }
  0x2f   : > { %769 = vmatmul.mubr.msk.f32.gmra.mrb[10].mxu1 %vm216_vm0, %v203_v14  ;;  %413 = vmatprep.mubr.f32.mxu0 %v928_v2 }
  0x30   : > { %509 = vmatprep.mubr.f32.mxu1 %v928_v2 }
  0x32   : > { %754 = vmatmul.mubr.msk.f32.gmra.mrb[12].mxu0 %vm216_vm0, %v188_v15 }
  0x33   : > { %770 = vmatmul.mubr.msk.f32.gmra.mrb[12].mxu1 %vm216_vm0, %v204_v16  ;;  %419 = vmatprep.mubr.f32.mxu0 %v928_v2 }
  0x34   : > { %515 = vmatprep.mubr.f32.mxu1 %v928_v2 }
  0x36   : > { %755 = vmatmul.mubr.msk.f32.gmra.mrb[14].mxu0 %vm216_vm0, %v189_v17 }
  0x37   : > { %771 = vmatmul.mubr.msk.f32.gmra.mrb[14].mxu1 %vm216_vm0, %v205_v18  ;;  %425 = vmatprep.mubr.f32.mxu0 %v928_v2 }
  0x38   : > { %521 = vmatprep.mubr.f32.mxu1 %v928_v2 }
  0x3a   : > { %756 = vmatmul.mubr.msk.f32.gmra.mrb[16].mxu0 %vm216_vm0, %v190_v19 }
  0x3b   : > { %772 = vmatmul.mubr.msk.f32.gmra.mrb[16].mxu1 %vm216_vm0, %v206_v20  ;;  %431 = vmatprep.mubr.f32.mxu0 %v928_v2 }
  0x3c   : > { %527 = vmatprep.mubr.f32.mxu1 %v928_v2 }
  0x3e   : > { %757 = vmatmul.mubr.msk.f32.gmra.mrb[18].mxu0 %vm216_vm0, %v191_v21 }
  0x3f   : > { %773 = vmatmul.mubr.msk.f32.gmra.mrb[18].mxu1 %vm216_vm0, %v207_v22  ;;  %437 = vmatprep.mubr.f32.mxu0 %v928_v2 }
  0x40   : > { %533 = vmatprep.mubr.f32.mxu1 %v928_v2 }
  0x42   : > { %758 = vmatmul.mubr.msk.f32.gmra.mrb[20].mxu0 %vm216_vm0, %v192_v23 }
  0x43   : > { %774 = vmatmul.mubr.msk.f32.gmra.mrb[20].mxu1 %vm216_vm0, %v208_v24  ;;  %443 = vmatprep.mubr.f32.mxu0 %v928_v2 }
  0x44   : > { %539 = vmatprep.mubr.f32.mxu1 %v928_v2 }
  0x46   : > { %759 = vmatmul.mubr.msk.f32.gmra.mrb[22].mxu0 %vm216_vm0, %v193_v25 }
  0x47   : > { %775 = vmatmul.mubr.msk.f32.gmra.mrb[22].mxu1 %vm216_vm0, %v209_v26  ;;  %449 = vmatprep.mubr.f32.mxu0 %v928_v2 }
  0x48   : > { %545 = vmatprep.mubr.f32.mxu1 %v928_v2 }
  0x4a   : > { %760 = vmatmul.mubr.msk.f32.gmra.mrb[24].mxu0 %vm216_vm0, %v194_v27 }
  0x4b   : > { %776 = vmatmul.mubr.msk.f32.gmra.mrb[24].mxu1 %vm216_vm0, %v210_v28  ;;  %455 = vmatprep.mubr.f32.mxu0 %v928_v2 }
  0x4c   : > { %551 = vmatprep.mubr.f32.mxu1 %v928_v2 }
  0x4e   : > { %761 = vmatmul.mubr.msk.f32.gmra.mrb[26].mxu0 %vm216_vm0, %v195_v29 }
  0x4f   : > { %777 = vmatmul.mubr.msk.f32.gmra.mrb[26].mxu1 %vm216_vm0, %v211_v30  ;;  %461 = vmatprep.mubr.f32.mxu0 %v928_v2 }
  0x50   : > { %557 = vmatprep.mubr.f32.mxu1 %v928_v2 }
  0x52   : > { %762 = vmatmul.mubr.msk.f32.gmra.mrb[28].mxu0 %vm216_vm0, %v196_v31 }
  0x53   : > { %778 = vmatmul.mubr.msk.f32.gmra.mrb[28].mxu1 %vm216_vm0, %v212_v32  ;;  %467 = vmatprep.mubr.f32.mxu0 %v928_v2 }
  0x54   : > { %563 = vmatprep.mubr.f32.mxu1 %v928_v2 }
  0x56   : > { %763 = vmatmul.mubr.msk.f32.gmra.mrb[30].mxu0 %vm216_vm0, %v197_v33 }
  0x57   : > { %779 = vmatmul.mubr.msk.f32.gmra.mrb[30].mxu1 %vm216_vm0, %v213_v34 }
  0xed   : > { %v379_v35 = vpop.f32.mrb[0].mxu0 }
  0xee   : > { %v475_v36 = vpop.f32.mrb[0].mxu1  ;;  %570 = vst [vmem:[%s1113_s6] sm:$0xff] %v379_v35  ;;  %v381_v37 = vpop.f32.mrb[1].mxu0 }
  0xef   : > { %602 = vst [vmem:[%s1113_s6 + $0x100] sm:$0xff] %v475_v36  ;;  %v477_v38 = vpop.f32.mrb[1].mxu1  ;;  %571 = vst [vmem:[%s1113_s6 + $0x8] sm:$0xff] %v381_v37 }
  0xf0   : > { %603 = vst [vmem:[%s1113_s6 + $0x108] sm:$0xff] %v477_v38 }
  0xf1   : > { %v385_v39 = vpop.f32.mrb[2].mxu0 }
  0xf2   : > { %v481_v40 = vpop.f32.mrb[2].mxu1  ;;  %572 = vst [vmem:[%s1113_s6 + $0x10] sm:$0xff] %v385_v39  ;;  %v387_v41 = vpop.f32.mrb[3].mxu0 }
  0xf3   : > { %604 = vst [vmem:[%s1113_s6 + $0x110] sm:$0xff] %v481_v40  ;;  %v483_v42 = vpop.f32.mrb[3].mxu1  ;;  %573 = vst [vmem:[%s1113_s6 + $0x18] sm:$0xff] %v387_v41 }
  0xf4   : > { %605 = vst [vmem:[%s1113_s6 + $0x118] sm:$0xff] %v483_v42 }
  0xf5   : > { %v391_v43 = vpop.f32.mrb[4].mxu0 }
  0xf6   : > { %v487_v44 = vpop.f32.mrb[4].mxu1  ;;  %574 = vst [vmem:[%s1113_s6 + $0x20] sm:$0xff] %v391_v43  ;;  %v393_v45 = vpop.f32.mrb[5].mxu0 }
  0xf7   : > { %606 = vst [vmem:[%s1113_s6 + $0x120] sm:$0xff] %v487_v44  ;;  %v489_v46 = vpop.f32.mrb[5].mxu1  ;;  %575 = vst [vmem:[%s1113_s6 + $0x28] sm:$0xff] %v393_v45 }
  0xf8   : > { %607 = vst [vmem:[%s1113_s6 + $0x128] sm:$0xff] %v489_v46 }
  0xf9   : > { %v397_v47 = vpop.f32.mrb[6].mxu0 }
  0xfa   : > { %v493_v48 = vpop.f32.mrb[6].mxu1  ;;  %576 = vst [vmem:[%s1113_s6 + $0x30] sm:$0xff] %v397_v47  ;;  %v399_v49 = vpop.f32.mrb[7].mxu0 }
  0xfb   : > { %608 = vst [vmem:[%s1113_s6 + $0x130] sm:$0xff] %v493_v48  ;;  %v495_v50 = vpop.f32.mrb[7].mxu1  ;;  %577 = vst [vmem:[%s1113_s6 + $0x38] sm:$0xff] %v399_v49 }
  0xfc   : > { %609 = vst [vmem:[%s1113_s6 + $0x138] sm:$0xff] %v495_v50 }
  0xfd   : > { %v403_v51 = vpop.f32.mrb[8].mxu0 }
  0xfe   : > { %v499_v52 = vpop.f32.mrb[8].mxu1  ;;  %578 = vst [vmem:[%s1113_s6 + $0x40] sm:$0xff] %v403_v51  ;;  %v405_v53 = vpop.f32.mrb[9].mxu0 }
  0xff   : > { %610 = vst [vmem:[%s1113_s6 + $0x140] sm:$0xff] %v499_v52  ;;  %v501_v54 = vpop.f32.mrb[9].mxu1  ;;  %579 = vst [vmem:[%s1113_s6 + $0x48] sm:$0xff] %v405_v53 }
 0x100   : > { %611 = vst [vmem:[%s1113_s6 + $0x148] sm:$0xff] %v501_v54 }
 0x101   : > { %v409_v55 = vpop.f32.mrb[10].mxu0 }
 0x102   : > { %v505_v56 = vpop.f32.mrb[10].mxu1  ;;  %580 = vst [vmem:[%s1113_s6 + $0x50] sm:$0xff] %v409_v55  ;;  %v411_v57 = vpop.f32.mrb[11].mxu0 }
 0x103   : > { %612 = vst [vmem:[%s1113_s6 + $0x150] sm:$0xff] %v505_v56  ;;  %v507_v58 = vpop.f32.mrb[11].mxu1  ;;  %581 = vst [vmem:[%s1113_s6 + $0x58] sm:$0xff] %v411_v57 }
 0x104   : > { %613 = vst [vmem:[%s1113_s6 + $0x158] sm:$0xff] %v507_v58 }
 0x105   : > { %v415_v59 = vpop.f32.mrb[12].mxu0 }
 0x106   : > { %v511_v60 = vpop.f32.mrb[12].mxu1  ;;  %582 = vst [vmem:[%s1113_s6 + $0x60] sm:$0xff] %v415_v59  ;;  %v417_v61 = vpop.f32.mrb[13].mxu0 }
 0x107   : > { %614 = vst [vmem:[%s1113_s6 + $0x160] sm:$0xff] %v511_v60  ;;  %v513_v62 = vpop.f32.mrb[13].mxu1  ;;  %583 = vst [vmem:[%s1113_s6 + $0x68] sm:$0xff] %v417_v61 }
 0x108   : > { %615 = vst [vmem:[%s1113_s6 + $0x168] sm:$0xff] %v513_v62 }
 0x109   : > { %v421_v63 = vpop.f32.mrb[14].mxu0 }
 0x10a   : > { %v517_v0 = vpop.f32.mrb[14].mxu1  ;;  %584 = vst [vmem:[%s1113_s6 + $0x70] sm:$0xff] %v421_v63  ;;  %v423_v1 = vpop.f32.mrb[15].mxu0 }
 0x10b   : > { %616 = vst [vmem:[%s1113_s6 + $0x170] sm:$0xff] %v517_v0  ;;  %v519_v2 = vpop.f32.mrb[15].mxu1  ;;  %585 = vst [vmem:[%s1113_s6 + $0x78] sm:$0xff] %v423_v1 }
 0x10c   : > { %617 = vst [vmem:[%s1113_s6 + $0x178] sm:$0xff] %v519_v2 }
 0x10d   : > { %v427_v3 = vpop.f32.mrb[16].mxu0 }
 0x10e   : > { %v523_v4 = vpop.f32.mrb[16].mxu1  ;;  %586 = vst [vmem:[%s1113_s6 + $0x80] sm:$0xff] %v427_v3  ;;  %v429_v5 = vpop.f32.mrb[17].mxu0 }
 0x10f   : > { %618 = vst [vmem:[%s1113_s6 + $0x180] sm:$0xff] %v523_v4  ;;  %v525_v6 = vpop.f32.mrb[17].mxu1  ;;  %587 = vst [vmem:[%s1113_s6 + $0x88] sm:$0xff] %v429_v5 }
 0x110   : > { %619 = vst [vmem:[%s1113_s6 + $0x188] sm:$0xff] %v525_v6 }
 0x111   : > { %v433_v7 = vpop.f32.mrb[18].mxu0 }
 0x112   : > { %v529_v8 = vpop.f32.mrb[18].mxu1  ;;  %588 = vst [vmem:[%s1113_s6 + $0x90] sm:$0xff] %v433_v7  ;;  %v435_v9 = vpop.f32.mrb[19].mxu0 }
 0x113   : > { %620 = vst [vmem:[%s1113_s6 + $0x190] sm:$0xff] %v529_v8  ;;  %v531_v10 = vpop.f32.mrb[19].mxu1  ;;  %589 = vst [vmem:[%s1113_s6 + $0x98] sm:$0xff] %v435_v9 }
 0x114   : > { %621 = vst [vmem:[%s1113_s6 + $0x198] sm:$0xff] %v531_v10 }
 0x115   : > { %v439_v11 = vpop.f32.mrb[20].mxu0 }
 0x116   : > { %v535_v12 = vpop.f32.mrb[20].mxu1  ;;  %590 = vst [vmem:[%s1113_s6 + $0xa0] sm:$0xff] %v439_v11  ;;  %v441_v13 = vpop.f32.mrb[21].mxu0 }
 0x117   : > { %622 = vst [vmem:[%s1113_s6 + $0x1a0] sm:$0xff] %v535_v12  ;;  %v537_v14 = vpop.f32.mrb[21].mxu1  ;;  %591 = vst [vmem:[%s1113_s6 + $0xa8] sm:$0xff] %v441_v13 }
 0x118   : > { %623 = vst [vmem:[%s1113_s6 + $0x1a8] sm:$0xff] %v537_v14 }
 0x119   : > { %v445_v15 = vpop.f32.mrb[22].mxu0 }
 0x11a   : > { %v541_v16 = vpop.f32.mrb[22].mxu1  ;;  %592 = vst [vmem:[%s1113_s6 + $0xb0] sm:$0xff] %v445_v15  ;;  %v447_v17 = vpop.f32.mrb[23].mxu0 }
 0x11b   : > { %624 = vst [vmem:[%s1113_s6 + $0x1b0] sm:$0xff] %v541_v16  ;;  %v543_v18 = vpop.f32.mrb[23].mxu1  ;;  %593 = vst [vmem:[%s1113_s6 + $0xb8] sm:$0xff] %v447_v17 }
 0x11c   : > { %625 = vst [vmem:[%s1113_s6 + $0x1b8] sm:$0xff] %v543_v18 }
 0x11d   : > { %v451_v19 = vpop.f32.mrb[24].mxu0 }
 0x11e   : > { %v547_v20 = vpop.f32.mrb[24].mxu1  ;;  %594 = vst [vmem:[%s1113_s6 + $0xc0] sm:$0xff] %v451_v19  ;;  %v453_v21 = vpop.f32.mrb[25].mxu0 }
 0x11f   : > { %626 = vst [vmem:[%s1113_s6 + $0x1c0] sm:$0xff] %v547_v20  ;;  %v549_v22 = vpop.f32.mrb[25].mxu1  ;;  %595 = vst [vmem:[%s1113_s6 + $0xc8] sm:$0xff] %v453_v21 }
 0x120   : > { %627 = vst [vmem:[%s1113_s6 + $0x1c8] sm:$0xff] %v549_v22 }
 0x121   : > { %v457_v23 = vpop.f32.mrb[26].mxu0 }
 0x122   : > { %v553_v24 = vpop.f32.mrb[26].mxu1  ;;  %596 = vst [vmem:[%s1113_s6 + $0xd0] sm:$0xff] %v457_v23  ;;  %v459_v25 = vpop.f32.mrb[27].mxu0 }
 0x123   : > { %628 = vst [vmem:[%s1113_s6 + $0x1d0] sm:$0xff] %v553_v24  ;;  %v555_v26 = vpop.f32.mrb[27].mxu1  ;;  %597 = vst [vmem:[%s1113_s6 + $0xd8] sm:$0xff] %v459_v25 }
 0x124   : > { %629 = vst [vmem:[%s1113_s6 + $0x1d8] sm:$0xff] %v555_v26 }
 0x125   : > { %v463_v27 = vpop.f32.mrb[28].mxu0 }
 0x126   : > { %v559_v28 = vpop.f32.mrb[28].mxu1  ;;  %598 = vst [vmem:[%s1113_s6 + $0xe0] sm:$0xff] %v463_v27  ;;  %v465_v29 = vpop.f32.mrb[29].mxu0 }
 0x127   : > { %630 = vst [vmem:[%s1113_s6 + $0x1e0] sm:$0xff] %v559_v28  ;;  %v561_v30 = vpop.f32.mrb[29].mxu1  ;;  %599 = vst [vmem:[%s1113_s6 + $0xe8] sm:$0xff] %v465_v29 }
 0x128   : > { %631 = vst [vmem:[%s1113_s6 + $0x1e8] sm:$0xff] %v561_v30 }
 0x129   : > { %v469_v31 = vpop.f32.mrb[30].mxu0 }
 0x12a   : > { %v565_v32 = vpop.f32.mrb[30].mxu1  ;;  %600 = vst [vmem:[%s1113_s6 + $0xf0] sm:$0xff] %v469_v31  ;;  %v471_v33 = vpop.f32.mrb[31].mxu0 }
 0x12b   : > { %632 = vst [vmem:[%s1113_s6 + $0x1f0] sm:$0xff] %v565_v32  ;;  %v567_v34 = vpop.f32.mrb[31].mxu1  ;;  %601 = vst [vmem:[%s1113_s6 + $0xf8] sm:$0xff] %v471_v33 }
 0x12c   : > { %633 = vst [vmem:[%s1113_s6 + $0x1f8] sm:$0xff] %v567_v34 }
 0x12d   : > { %861 = shalt.err (!%p858_p5)
}
 0x12e   : > { %s862_s26 = scalar_lea.hbm %s1180_s18, 8192  ;;  %s866_s29 = scalar_lea.hbm %s1238_s2, 16384 }
 0x12f   : > { %p863_p6 = scmp.ne.s32.totalorder %s1180_s18, %s862_s26  ;;  %p867_p10 = scmp.lt.u32.totalorder %s1180_s18, %s1238_s2 }
 0x130   : > { %p868_p11 = scmp.lt.u32.totalorder %s866_s29, %s862_s26  ;;  %p870_p13 = scmp.lt.u32.totalorder %s862_s26, %s1180_s18 }
 0x131   : > { %p864_p7 = pnand %p863_p6, %p987_p4 }
 0x132   : > { %p869_p12 = por %p868_p11, %p867_p10 }
 0x133   : > { %p865_p9 = pneg %p864_p7 }
 0x134   : > { %p871_p0 = por %p870_p13, %p869_p12 }
 0x136   : > { %p872_p1 = pnand %p871_p0, %p865_p9 }
 0x138   : > { %875 = shalt.err (!%p872_p1)
}
 0x139   : > { %s930_s4 = smov 256   ;;  %s931_s5 = smov 16  }
 0x13a   : > { %790 = dma.vmem_to_hbm [thread:$0]  (%p987_p4), %s1182_s8, 8192, %s1180_s18, %s1190_s12, %s930_s4, %s930_s4, %s931_s5  }
 0x13b PF: > { %p796_p2 = scmp.ge.s32.totalorder %s926_s14, 2  ;;  %s666_s6 = sand.u32 1, %s906_s9  }
 0x13c   : > { %s667_s7 = scalar_lea.sflag [#allocation3], %s666_s6 }
 0x13d   : > { %p793_p3 = pnand %p796_p2, %p994_p8 }
 0x13f   : > { %901 = dma.done.wait (!%p793_p3), %s667_s7, 8192  }
 0x140   : > { %903 = vsyncadd (!%p793_p3), %s667_s7, 4294959104  ;;  %s15_s14 = sadd.s32 1, %s926_s14   ;;  %s1241_s9 = smov %s910_s10 }
 0x141   : > { %p12_p5 = scmp.ge.s32.totalorder %s15_s14, 4   ;;  %s1242_s10 = smov %s914_s11 }
 0x142   : > { %s1243_s11 = smov %s1000_s22  ;;  %s1244_s12 = smov %s922_s13 }
 0x143   : > { %s1245_s13 = smov %s1247_s17  ;;  %14 = sbr.rel (!%p12_p5) target bundleno = 4 (0x4), region = 66 }
 0x14a   :  { %672 = vsyncpa [#allocation3], 1 }
 0x14b   :  { %674 = vsyncpa [#allocation3 + $0x1], 1 }

</bundles_post_ra>
